<compile_context>
chip_gen: v7x
topology: tpu7x:2x2x1
jax: 0.10.0
libtpu: 0.0.40
codegen_flags: <defaults>
</compile_context>

<pallas_src>
import functools

import jax
import jax.numpy as jnp
from jax.experimental import pallas as pl
from jax.experimental.pallas import tpu as pltpu


# ----------------------------- numerics helpers ------------------------------

def _log_sigmoid(x):
    # numerically stable log(sigmoid(x)) = min(x, 0) - log(1 + exp(-|x|))
    return jnp.minimum(x, 0.0) - jnp.log(1.0 + jnp.exp(-jnp.abs(x)))


def _log_softmax_lastdim(x):
    m = jnp.max(x, axis=-1, keepdims=True)
    s = x - m
    return s - jnp.log(jnp.sum(jnp.exp(s), axis=-1, keepdims=True))


# ------------------------------ fused kernel ---------------------------------

def hydra_heads_kernel(pooled_ref, wf_ref, bf_ref, bert_ref, mask_ref,
                       wse_ref, bse_ref, slab_ref, se_ref, *, segments):
    """All HydraNet heads for one batch block of Bt examples.

    Pooled heads: [Bt,H] @ [H,128] fused matmul; per-head log_sigmoid /
      log_softmax via static lane-segment masks; one lane-dense [Bt,128] store.
    Start/end head: [Bt*S,H](bf16) @ [H,2] on the MXU, relayout the tiny score
      to [Bt,2,S] (S on the lane axis), mask + log_softmax over S, one
      [Bt,2,S] store.
    """
    # ---- pooled heads (column_func / agg / op / where_num) ----
    z = jnp.dot(pooled_ref[...], wf_ref[...],
                preferred_element_type=jnp.float32) + bf_ref[...]      # [Bt, 128]
    lane = jax.lax.broadcasted_iota(jnp.int32, z.shape, 1)
    neg = jnp.float32(-1e30)
    out = jnp.zeros_like(z)
    for kind, lo, hi in segments:                  # static python loop (4 segs)
        m = (lane >= lo) & (lane < hi)
        if kind == "sigmoid":
            val = _log_sigmoid(z)
        else:                                      # log_softmax over lanes [lo,hi)
            zm = jnp.where(m, z, neg)
            mx = jnp.max(zm, axis=-1, keepdims=True)
            e = jnp.exp(zm - mx)                   # masked lanes underflow to 0
            s = jnp.sum(e, axis=-1, keepdims=True)
            val = z - mx - jnp.log(s)
        out = jnp.where(m, val, out)
    slab_ref[...] = out                            # single lane-dense store

    # ---- start/end head over this batch block ----
    bt, s, h = bert_ref.shape
    x2 = bert_ref[...].reshape(bt * s, h)          # free when S % 8 == 0
    se = jnp.dot(x2, wse_ref[...],
                 preferred_element_type=jnp.float32) + bse_ref[...]    # [Bt*S, 2]
    se_t = jnp.swapaxes(se.reshape(bt, s, 2), 1, 2)        # [Bt, 2, S] (S on lanes)
    mask_f = mask_ref[...].astype(jnp.float32)             # [Bt, 1, S] broadcast
    masked = se_t * mask_f - 1000000.0 * (1.0 - mask_f)
    se_ref[...] = _log_softmax_lastdim(masked)             # single merged store


# ----------------------- one-time parameter preparation ----------------------

def prepare_head_params(params, bert_dtype):
    """Fuse + lane-pad the pooled-head weights once (stable HBM buffers)."""
    A = params["w_agg"].shape[1]
    O = params["w_op"].shape[1]
    W1 = params["w_wn"].shape[1]
    ntot = 3 + A + O + W1
    npad = max(128, ((ntot + 127) // 128) * 128)

    w_cat = jnp.concatenate(
        [params["w_cf"], params["w_agg"], params["w_op"], params["w_wn"]],
        axis=1).astype(jnp.float32)                         # [H, ntot]
    b_cat = jnp.concatenate(
        [params["b_cf"], params["b_agg"], params["b_op"], params["b_wn"]]
    ).astype(jnp.float32)                                   # [ntot]

    return {
        "w_fused": jnp.pad(w_cat, ((0, 0), (0, npad - ntot))),
        "b_fused": jnp.pad(b_cat, (0, npad - ntot)).reshape(1, npad),
        "w_se": params["w_se"].astype(bert_dtype),          # [H, 2]
        "b_se": params["b_se"].astype(jnp.float32).reshape(1, 2),
        "segments": (("sigmoid", 0, 3),
                     ("softmax", 3, 3 + A),
                     ("softmax", 3 + A, 3 + A + O),
                     ("softmax", 3 + A + O, ntot)),
        "splits": (3, 3 + A, 3 + A + O, ntot),
        "npad": npad,
    }


# ------------------------- generation-aware sizing ---------------------------

def _vmem_cap_bytes():
    phys = 64 << 20                       # conservative default (v7x physical)
    try:
        phys = int(pltpu.get_tpu_info().vmem_capacity_bytes)
    except Exception:
        pass
    # leave ~28 MiB headroom for compiler scratch; never request > 100 MiB
    return int(max(16 << 20, min(phys - (28 << 20), 100 << 20)))


def _choose_bt(B, S, H, itemsize, cap):
    """Examples per grid step: block ~cap/6 (<=8 MiB), sublane-legal."""
    target = min(8 << 20, max(1 << 20, cap // 6))
    per_ex = max(S * H * itemsize, 1)
    bt = max(1, min(B, target // per_ex))
    if bt >= B and B >= 16:
        bt = (B + 1) // 2                 # expose >=2 grid steps (v7x: 2 TCs)
    if bt < B:
        bt = min(B, max(8, (bt // 8) * 8))  # (Bt, H)/(Bt,128) sublane rule
    return int(bt)


# --------------------------------- wrapper -----------------------------------

def hydra_heads(pooled, bert_output, input_mask, prepared):
    """Runs all HydraNet heads with a single fused Pallas kernel.

    pooled      : [B, H] float32
    bert_output : [B, S, H] (bf16 or f32; used in its native dtype)
    input_mask  : [B, S] integer mask
    prepared    : output of prepare_head_params()
    """
    B, S, H = bert_output.shape
    pooled = pooled.astype(jnp.float32)
    mask3 = input_mask.reshape(B, 1, S)            # native int dtype, cast in-kernel

    npad = prepared["npad"]
    itemsize = jnp.dtype(bert_output.dtype).itemsize
    cap = _vmem_cap_bytes()
    bt = _choose_bt(B, S, H, itemsize, cap)
    grid = (pl.cdiv(B, bt),)

    cost = pl.CostEstimate(
        flops=int(2 * B * S * H * 2 + 2 * B * H * npad),
        transcendentals=int(2 * B * S + 4 * B * npad),
        bytes_accessed=int(B * S * H * itemsize
                           + B * H * 4
                           + B * S * jnp.dtype(input_mask.dtype).itemsize
                           + B * npad * 4 + 2 * B * S * 4
                           + H * npad * 4 + H * 2 * itemsize),
    )

    slab, se_out = pl.pallas_call(
        functools.partial(hydra_heads_kernel, segments=prepared["segments"]),
        out_shape=(jax.ShapeDtypeStruct((B, npad), jnp.float32),     # pooled heads
                   jax.ShapeDtypeStruct((B, 2, S), jnp.float32)),    # start/end
        grid=grid,
        in_specs=[
            pl.BlockSpec((bt, H), lambda i: (i, 0)),        # pooled (batch-blocked)
            pl.BlockSpec((H, npad), lambda i: (0, 0)),      # fused head weights (resident)
            pl.BlockSpec((1, npad), lambda i: (0, 0)),      # fused head bias (resident)
            pl.BlockSpec((bt, S, H), lambda i: (i, 0, 0)),  # bert block (pipelined bf16)
            pl.BlockSpec((bt, 1, S), lambda i: (i, 0, 0)),  # mask block (int)
            pl.BlockSpec((H, 2), lambda i: (0, 0)),         # start/end weights (resident)
            pl.BlockSpec((1, 2), lambda i: (0, 0)),         # start/end bias (resident)
        ],
        out_specs=(
            pl.BlockSpec((bt, npad), lambda i: (i, 0)),     # pooled-head slab
            pl.BlockSpec((bt, 2, S), lambda i: (i, 0, 0)),  # merged start/end slab
        ),
        compiler_params=pltpu.CompilerParams(
            dimension_semantics=("parallel",),
            vmem_limit_bytes=cap,
        ),
        cost_estimate=cost,
    )(pooled, prepared["w_fused"], prepared["b_fused"],
      bert_output, mask3, prepared["w_se"], prepared["b_se"])

    s1, s2, s3, ntot = prepared["splits"]
    return {
        "column_func": slab[:, 0:s1],
        "agg": slab[:, s1:s2],
        "op": slab[:, s2:s3],
        "where_num": slab[:, s3:ntot],
        "value_start": se_out[:, 0, :],
        "value_end": se_out[:, 1, :],
        "loss": None,   # labels (select / agg / where ...) are None here
    }


# ------------------- deterministic parameter / input setup ------------------

def make_params(key, hidden, agg_num, op_num, where_column_num):
    ks = jax.random.split(key, 10)
    scale = 0.02

    def lin(kw, out_dim):
        # stored as [H, out] (transposed vs. torch nn.Linear's [out, H])
        return scale * jax.random.normal(kw, (hidden, out_dim), jnp.float32)

    return {
        "w_cf": lin(ks[0], 3),
        "b_cf": jnp.zeros((3,), jnp.float32),
        "w_agg": lin(ks[1], agg_num),
        "b_agg": jnp.zeros((agg_num,), jnp.float32),
        "w_op": lin(ks[2], op_num),
        "b_op": jnp.zeros((op_num,), jnp.float32),
        "w_wn": lin(ks[3], where_column_num + 1),
        "b_wn": jnp.zeros((where_column_num + 1,), jnp.float32),
        "w_se": lin(ks[4], 2),
        "b_se": jnp.zeros((2,), jnp.float32),
    }


def make_base_model(key, vocab, seq, hidden):
    """Tiny deterministic stand-in for the pretrained transformer base model."""
    ks = jax.random.split(key, 4)
    emb = 0.02 * jax.random.normal(ks[0], (vocab, hidden), jnp.float32)
    pos = 0.02 * jax.random.normal(ks[1], (seq, hidden), jnp.float32)
    w_enc = 0.1 * jax.random.normal(ks[2], (hidden, hidden), jnp.float32)
    w_pool = 0.1 * jax.random.normal(ks[3], (hidden, hidden), jnp.float32)

    def forward(input_ids, input_mask, segment_ids):
        h = emb[input_ids] + pos[None, :, :]          # [B, S, H]
        h = h + segment_ids[..., None].astype(jnp.float32) * 0.01
        bert_output = jnp.tanh(h @ w_enc)             # [B, S, H] f32
        bert_output = bert_output * input_mask[..., None].astype(jnp.float32)
        pooled_output = jnp.tanh(bert_output[:, 0, :] @ w_pool)  # [B, H] f32
        # hand the token tensor to the heads in bf16 (native TPU activation
        # dtype) -> the head kernel DMAs half the bytes of the dominant tensor
        return bert_output.astype(jnp.bfloat16), pooled_output

    return forward


def reference_heads(pooled, bert_output, input_mask, params):
    """Plain-JAX reference (f32) mirroring the PyTorch forward."""
    x = bert_output.astype(jnp.float32)
    cf = pooled @ params["w_cf"] + params["b_cf"]
    agg = pooled @ params["w_agg"] + params["b_agg"]
    op = pooled @ params["w_op"] + params["b_op"]
    wn = pooled @ params["w_wn"] + params["b_wn"]
    se = x @ params["w_se"] + params["b_se"]                   # [B, S, 2]
    m = input_mask.astype(jnp.float32)
    start = se[:, :, 0] * m - 1000000.0 * (1.0 - m)
    end = se[:, :, 1] * m - 1000000.0 * (1.0 - m)
    return {
        "column_func": jax.nn.log_sigmoid(cf),
        "agg": jax.nn.log_softmax(agg, axis=1),
        "op": jax.nn.log_softmax(op, axis=1),
        "where_num": jax.nn.log_softmax(wn, axis=1),
        "value_start": jax.nn.log_softmax(start, axis=1),
        "value_end": jax.nn.log_softmax(end, axis=1),
    }


# --------------------------------- main --------------------------------------

if __name__ == "__main__":
    # config: hidden=32, seq=8, batch=2, agg_num=6, op_num=4, where_column_num=4
    B, S, H = 2, 8, 32
    AGG_NUM, OP_NUM, WHERE_COL_NUM = 6, 4, 4
    VOCAB = 50

    key = jax.random.PRNGKey(0)
    k_ids, k_params, k_base = jax.random.split(key, 3)

    input_ids = jax.random.randint(k_ids, (B, S), 0, VOCAB, dtype=jnp.int32)
    input_mask = jnp.concatenate(
        [jnp.ones((B, S - 2), jnp.int32), jnp.zeros((B, 2), jnp.int32)], axis=1)
    segment_ids = jnp.concatenate(
        [jnp.zeros((B, S // 2), jnp.int32), jnp.ones((B, S - S // 2), jnp.int32)],
        axis=1)

    params = make_params(k_params, H, AGG_NUM, OP_NUM, WHERE_COL_NUM)
    base_model = make_base_model(k_base, VOCAB, S, H)

    # base model (plain-JAX glue), dropout == identity (inference)
    bert_output, pooled_output = base_model(input_ids, input_mask, segment_ids)

    # one-time parameter fusion + the fused HydraNet head kernel
    prepared = prepare_head_params(params, bert_output.dtype)
    out = hydra_heads(pooled_output, bert_output, input_mask, prepared)
    jax.block_until_ready(out["value_end"])

    # shape checks
    assert out["column_func"].shape == (B, 3)
    assert out["agg"].shape == (B, AGG_NUM)
    assert out["op"].shape == (B, OP_NUM)
    assert out["where_num"].shape == (B, WHERE_COL_NUM + 1)
    assert out["value_start"].shape == (B, S)
    assert out["value_end"].shape == (B, S)
    assert out["loss"] is None

    # numeric checks vs the plain-JAX reference
    ref = reference_heads(pooled_output.astype(jnp.float32), bert_output,
                          input_mask, params)
    for name in ("column_func", "agg", "op", "where_num"):
        assert bool(jnp.max(jnp.abs(out[name] - ref[name])) < 1e-3), name
    for name in ("value_start", "value_end"):   # bf16 matmul -> compare in prob space
        assert bool(jnp.max(jnp.abs(jnp.exp(out[name]) - jnp.exp(ref[name]))) < 5e-3), name
    assert bool(jnp.all(jnp.abs(jnp.sum(jnp.exp(out["agg"]), axis=-1) - 1.0) < 1e-3))
    assert bool(jnp.all(jnp.abs(jnp.sum(jnp.exp(out["value_start"]), axis=-1) - 1.0) < 1e-3))

    print("KERNEL_OK")
</pallas_src>

<mosaic_0001>
module attributes {stable_mosaic.version = 11 : i64} {
  func.func @hydra_heads_kernel(%arg0: i32, %arg1: memref<2x32xf32, #tpu.memory_space<vmem>>, %arg2: memref<32x128xf32, #tpu.memory_space<vmem>>, %arg3: memref<1x128xf32, #tpu.memory_space<vmem>>, %arg4: memref<2x8x32xbf16, #tpu.memory_space<vmem>>, %arg5: memref<2x1x8xi32, #tpu.memory_space<vmem>>, %arg6: memref<32x2xbf16, #tpu.memory_space<vmem>>, %arg7: memref<1x2xf32, #tpu.memory_space<vmem>>, %arg8: memref<2x128xf32, #tpu.memory_space<vmem>>, %arg9: memref<2x2x8xf32, #tpu.memory_space<vmem>>) attributes {dimension_semantics = [#tpu.dimension_semantics<parallel>], iteration_bounds = array<i64: 1>, scalar_prefetch = 0 : i64, scratch_operands = 0 : i64, tpu.core_type = #tpu.core_type<tc>, window_params = [{transform_indices = @transform_0, window_bounds = array<i64: 2, 32>}, {pipeline_mode = #tpu.pipeline_mode<synchronous>, transform_indices = @transform_1, window_bounds = array<i64: 32, 128>}, {pipeline_mode = #tpu.pipeline_mode<synchronous>, transform_indices = @transform_2, window_bounds = array<i64: 1, 128>}, {transform_indices = @transform_3, window_bounds = array<i64: 2, 8, 32>}, {transform_indices = @transform_4, window_bounds = array<i64: 2, 1, 8>}, {pipeline_mode = #tpu.pipeline_mode<synchronous>, transform_indices = @transform_5, window_bounds = array<i64: 32, 2>}, {pipeline_mode = #tpu.pipeline_mode<synchronous>, transform_indices = @transform_6, window_bounds = array<i64: 1, 2>}, {transform_indices = @transform_7, window_bounds = array<i64: 2, 128>}, {transform_indices = @transform_8, window_bounds = array<i64: 2, 2, 8>}]} {
    %c0 = arith.constant 0 : index
    %c0_0 = arith.constant 0 : index
    %0 = vector.load %arg1[%c0, %c0_0] : memref<2x32xf32, #tpu.memory_space<vmem>>, vector<2x32xf32>
    %c0_1 = arith.constant 0 : index
    %c0_2 = arith.constant 0 : index
    %1 = vector.load %arg2[%c0_1, %c0_2] : memref<32x128xf32, #tpu.memory_space<vmem>>, vector<32x128xf32>
    %cst = arith.constant dense<0.000000e+00> : vector<2x128xf32>
    %2 = tpu.matmul %0, %1, %cst {dimension_numbers = #tpu.dot_dimension_numbers<[1], [0], [0], [1], [0, 0, 1, 1], [], []>} : vector<2x32xf32>, vector<32x128xf32>, vector<2x128xf32> -> vector<2x128xf32>
    %c0_3 = arith.constant 0 : index
    %c0_4 = arith.constant 0 : index
    %3 = vector.load %arg3[%c0_3, %c0_4] : memref<1x128xf32, #tpu.memory_space<vmem>>, vector<1x128xf32>
    %4 = vector.broadcast %3 : vector<1x128xf32> to vector<2x128xf32>
    %5 = arith.addf %2, %4 : vector<2x128xf32>
    %6 = tpu.iota {dimensions = array<i32: 1>} : vector<2x128xi32>
    %cst_5 = arith.constant 0.000000e+00 : f32
    %7 = vector.broadcast %cst_5 : f32 to vector<2x128xf32>
    %c0_i32 = arith.constant 0 : i32
    %8 = vector.broadcast %c0_i32 : i32 to vector<2x128xi32>
    %9 = arith.cmpi sge, %6, %8 : vector<2x128xi32>
    %c3_i32 = arith.constant 3 : i32
    %10 = vector.broadcast %c3_i32 : i32 to vector<2x128xi32>
    %11 = arith.cmpi slt, %6, %10 : vector<2x128xi32>
    %12 = arith.andi %9, %11 : vector<2x128xi1>
    %cst_6 = arith.constant 0.000000e+00 : f32
    %13 = vector.broadcast %cst_6 : f32 to vector<2x128xf32>
    %14 = arith.minimumf %5, %13 : vector<2x128xf32>
    %15 = math.absf %5 : vector<2x128xf32>
    %cst_7 = arith.constant 0.000000e+00 : f32
    %16 = vector.broadcast %cst_7 : f32 to vector<2x128xf32>
    %17 = arith.subf %16, %15 : vector<2x128xf32>
    %18 = math.exp %17 : vector<2x128xf32>
    %cst_8 = arith.constant 1.000000e+00 : f32
    %19 = vector.broadcast %cst_8 : f32 to vector<2x128xf32>
    %20 = arith.addf %19, %18 : vector<2x128xf32>
    %21 = math.log %20 : vector<2x128xf32>
    %22 = arith.subf %14, %21 : vector<2x128xf32>
    %23 = arith.select %12, %22, %7 : vector<2x128xi1>, vector<2x128xf32>
    %c3_i32_9 = arith.constant 3 : i32
    %24 = vector.broadcast %c3_i32_9 : i32 to vector<2x128xi32>
    %25 = arith.cmpi sge, %6, %24 : vector<2x128xi32>
    %c9_i32 = arith.constant 9 : i32
    %26 = vector.broadcast %c9_i32 : i32 to vector<2x128xi32>
    %27 = arith.cmpi slt, %6, %26 : vector<2x128xi32>
    %28 = arith.andi %25, %27 : vector<2x128xi1>
    %cst_10 = arith.constant -1.000000e+30 : f32
    %29 = vector.broadcast %cst_10 : f32 to vector<2x128xf32>
    %30 = arith.select %28, %5, %29 : vector<2x128xi1>, vector<2x128xf32>
    %cst_11 = arith.constant dense<0xFF800000> : vector<2xf32>
    %31 = vector.multi_reduction <maximumf>, %30, %cst_11 [1] : vector<2x128xf32> to vector<2xf32>
    %32 = vector.shape_cast %31 : vector<2xf32> to vector<2x1xf32>
    %33 = vector.broadcast %32 : vector<2x1xf32> to vector<2x128xf32>
    %34 = arith.subf %30, %33 : vector<2x128xf32>
    %35 = math.exp %34 : vector<2x128xf32>
    %cst_12 = arith.constant dense<0.000000e+00> : vector<2xf32>
    %36 = vector.multi_reduction <add>, %35, %cst_12 [1] : vector<2x128xf32> to vector<2xf32>
    %37 = vector.shape_cast %36 : vector<2xf32> to vector<2x1xf32>
    %38 = vector.broadcast %32 : vector<2x1xf32> to vector<2x128xf32>
    %39 = arith.subf %5, %38 : vector<2x128xf32>
    %40 = math.log %37 : vector<2x1xf32>
    %41 = vector.broadcast %40 : vector<2x1xf32> to vector<2x128xf32>
    %42 = arith.subf %39, %41 : vector<2x128xf32>
    %43 = arith.select %28, %42, %23 : vector<2x128xi1>, vector<2x128xf32>
    %c9_i32_13 = arith.constant 9 : i32
    %44 = vector.broadcast %c9_i32_13 : i32 to vector<2x128xi32>
    %45 = arith.cmpi sge, %6, %44 : vector<2x128xi32>
    %c13_i32 = arith.constant 13 : i32
    %46 = vector.broadcast %c13_i32 : i32 to vector<2x128xi32>
    %47 = arith.cmpi slt, %6, %46 : vector<2x128xi32>
    %48 = arith.andi %45, %47 : vector<2x128xi1>
    %cst_14 = arith.constant -1.000000e+30 : f32
    %49 = vector.broadcast %cst_14 : f32 to vector<2x128xf32>
    %50 = arith.select %48, %5, %49 : vector<2x128xi1>, vector<2x128xf32>
    %cst_15 = arith.constant dense<0xFF800000> : vector<2xf32>
    %51 = vector.multi_reduction <maximumf>, %50, %cst_15 [1] : vector<2x128xf32> to vector<2xf32>
    %52 = vector.shape_cast %51 : vector<2xf32> to vector<2x1xf32>
    %53 = vector.broadcast %52 : vector<2x1xf32> to vector<2x128xf32>
    %54 = arith.subf %50, %53 : vector<2x128xf32>
    %55 = math.exp %54 : vector<2x128xf32>
    %cst_16 = arith.constant dense<0.000000e+00> : vector<2xf32>
    %56 = vector.multi_reduction <add>, %55, %cst_16 [1] : vector<2x128xf32> to vector<2xf32>
    %57 = vector.shape_cast %56 : vector<2xf32> to vector<2x1xf32>
    %58 = vector.broadcast %52 : vector<2x1xf32> to vector<2x128xf32>
    %59 = arith.subf %5, %58 : vector<2x128xf32>
    %60 = math.log %57 : vector<2x1xf32>
    %61 = vector.broadcast %60 : vector<2x1xf32> to vector<2x128xf32>
    %62 = arith.subf %59, %61 : vector<2x128xf32>
    %63 = arith.select %48, %62, %43 : vector<2x128xi1>, vector<2x128xf32>
    %c13_i32_17 = arith.constant 13 : i32
    %64 = vector.broadcast %c13_i32_17 : i32 to vector<2x128xi32>
    %65 = arith.cmpi sge, %6, %64 : vector<2x128xi32>
    %c18_i32 = arith.constant 18 : i32
    %66 = vector.broadcast %c18_i32 : i32 to vector<2x128xi32>
    %67 = arith.cmpi slt, %6, %66 : vector<2x128xi32>
    %68 = arith.andi %65, %67 : vector<2x128xi1>
    %cst_18 = arith.constant -1.000000e+30 : f32
    %69 = vector.broadcast %cst_18 : f32 to vector<2x128xf32>
    %70 = arith.select %68, %5, %69 : vector<2x128xi1>, vector<2x128xf32>
    %cst_19 = arith.constant dense<0xFF800000> : vector<2xf32>
    %71 = vector.multi_reduction <maximumf>, %70, %cst_19 [1] : vector<2x128xf32> to vector<2xf32>
    %72 = vector.shape_cast %71 : vector<2xf32> to vector<2x1xf32>
    %73 = vector.broadcast %72 : vector<2x1xf32> to vector<2x128xf32>
    %74 = arith.subf %70, %73 : vector<2x128xf32>
    %75 = math.exp %74 : vector<2x128xf32>
    %cst_20 = arith.constant dense<0.000000e+00> : vector<2xf32>
    %76 = vector.multi_reduction <add>, %75, %cst_20 [1] : vector<2x128xf32> to vector<2xf32>
    %77 = vector.shape_cast %76 : vector<2xf32> to vector<2x1xf32>
    %78 = vector.broadcast %72 : vector<2x1xf32> to vector<2x128xf32>
    %79 = arith.subf %5, %78 : vector<2x128xf32>
    %80 = math.log %77 : vector<2x1xf32>
    %81 = vector.broadcast %80 : vector<2x1xf32> to vector<2x128xf32>
    %82 = arith.subf %79, %81 : vector<2x128xf32>
    %83 = arith.select %68, %82, %63 : vector<2x128xi1>, vector<2x128xf32>
    %c0_21 = arith.constant 0 : index
    %c0_22 = arith.constant 0 : index
    %84 = vector.load %arg8[%c0_21, %c0_22] : memref<2x128xf32, #tpu.memory_space<vmem>>, vector<2x128xf32>
    tpu.vector_store %arg8[%c0_21, %c0_22], %83 {strides = array<i32>} : memref<2x128xf32, #tpu.memory_space<vmem>>, vector<2x128xf32>,
    %c0_23 = arith.constant 0 : index
    %c0_24 = arith.constant 0 : index
    %c0_25 = arith.constant 0 : index
    %85 = vector.load %arg4[%c0_23, %c0_24, %c0_25] : memref<2x8x32xbf16, #tpu.memory_space<vmem>>, vector<2x8x32xbf16>
    %86 = vector.shape_cast %85 : vector<2x8x32xbf16> to vector<16x32xbf16>
    %c0_26 = arith.constant 0 : index
    %c0_27 = arith.constant 0 : index
    %87 = vector.load %arg6[%c0_26, %c0_27] : memref<32x2xbf16, #tpu.memory_space<vmem>>, vector<32x2xbf16>
    %cst_28 = arith.constant dense<0.000000e+00> : vector<16x2xf32>
    %88 = tpu.matmul %86, %87, %cst_28 {dimension_numbers = #tpu.dot_dimension_numbers<[1], [0], [0], [1], [0, 0, 1, 1], [], []>} : vector<16x32xbf16>, vector<32x2xbf16>, vector<16x2xf32> -> vector<16x2xf32>
    %c0_29 = arith.constant 0 : index
    %c0_30 = arith.constant 0 : index
    %89 = vector.load %arg7[%c0_29, %c0_30] : memref<1x2xf32, #tpu.memory_space<vmem>>, vector<1x2xf32>
    %90 = vector.broadcast %89 : vector<1x2xf32> to vector<16x2xf32>
    %91 = arith.addf %88, %90 : vector<16x2xf32>
    %92 = vector.shape_cast %91 : vector<16x2xf32> to vector<2x8x2xf32>
    %93 = tpu.transpose %92, [0, 2, 1] : vector<2x8x2xf32> -> vector<2x2x8xf32>
    %c0_31 = arith.constant 0 : index
    %c0_32 = arith.constant 0 : index
    %c0_33 = arith.constant 0 : index
    %94 = vector.load %arg5[%c0_31, %c0_32, %c0_33] : memref<2x1x8xi32, #tpu.memory_space<vmem>>, vector<2x1x8xi32>
    %95 = arith.sitofp %94 : vector<2x1x8xi32> to vector<2x1x8xf32>
    %96 = vector.broadcast %95 : vector<2x1x8xf32> to vector<2x2x8xf32>
    %97 = arith.mulf %93, %96 : vector<2x2x8xf32>
    %cst_34 = arith.constant 1.000000e+00 : f32
    %98 = vector.broadcast %cst_34 : f32 to vector<2x1x8xf32>
    %99 = arith.subf %98, %95 : vector<2x1x8xf32>
    %cst_35 = arith.constant 1.000000e+06 : f32
    %100 = vector.broadcast %cst_35 : f32 to vector<2x1x8xf32>
    %101 = arith.mulf %100, %99 : vector<2x1x8xf32>
    %102 = vector.broadcast %101 : vector<2x1x8xf32> to vector<2x2x8xf32>
    %103 = arith.subf %97, %102 : vector<2x2x8xf32>
    %cst_36 = arith.constant dense<0xFF800000> : vector<2x2xf32>
    %104 = vector.multi_reduction <maximumf>, %103, %cst_36 [2] : vector<2x2x8xf32> to vector<2x2xf32>
    %105 = vector.shape_cast %104 : vector<2x2xf32> to vector<2x2x1xf32>
    %106 = vector.broadcast %105 : vector<2x2x1xf32> to vector<2x2x8xf32>
    %107 = arith.subf %103, %106 : vector<2x2x8xf32>
    %108 = math.exp %107 : vector<2x2x8xf32>
    %cst_37 = arith.constant dense<0.000000e+00> : vector<2x2xf32>
    %109 = vector.multi_reduction <add>, %108, %cst_37 [2] : vector<2x2x8xf32> to vector<2x2xf32>
    %110 = vector.shape_cast %109 : vector<2x2xf32> to vector<2x2x1xf32>
    %111 = math.log %110 : vector<2x2x1xf32>
    %112 = vector.broadcast %111 : vector<2x2x1xf32> to vector<2x2x8xf32>
    %113 = arith.subf %107, %112 : vector<2x2x8xf32>
    %c0_38 = arith.constant 0 : index
    %c0_39 = arith.constant 0 : index
    %c0_40 = arith.constant 0 : index
    %114 = vector.load %arg9[%c0_38, %c0_39, %c0_40] : memref<2x2x8xf32, #tpu.memory_space<vmem>>, vector<2x2x8xf32>
    tpu.vector_store %arg9[%c0_38, %c0_39, %c0_40], %113 {strides = array<i32>} : memref<2x2x8xf32, #tpu.memory_space<vmem>>, vector<2x2x8xf32>,
    return
  }
  func.func @transform_0(%arg0: i32) -> (i32, i32) {
    %c0_i32 = arith.constant 0 : i32
    %c0_i32_0 = arith.constant 0 : i32
    return %arg0, %c0_i32 : i32, i32
  }
  func.func @transform_1(%arg0: i32) -> (i32, i32) {
    %c0_i32 = arith.constant 0 : i32
    %c0_i32_0 = arith.constant 0 : i32
    %c0_i32_1 = arith.constant 0 : i32
    return %c0_i32, %c0_i32_0 : i32, i32
  }
  func.func @transform_2(%arg0: i32) -> (i32, i32) {
    %c0_i32 = arith.constant 0 : i32
    %c0_i32_0 = arith.constant 0 : i32
    %c0_i32_1 = arith.constant 0 : i32
    return %c0_i32, %c0_i32_0 : i32, i32
  }
  func.func @transform_3(%arg0: i32) -> (i32, i32, i32) {
    %c0_i32 = arith.constant 0 : i32
    %c0_i32_0 = arith.constant 0 : i32
    %c0_i32_1 = arith.constant 0 : i32
    return %arg0, %c0_i32, %c0_i32_0 : i32, i32, i32
  }
  func.func @transform_4(%arg0: i32) -> (i32, i32, i32) {
    %c0_i32 = arith.constant 0 : i32
    %c0_i32_0 = arith.constant 0 : i32
    %c0_i32_1 = arith.constant 0 : i32
    return %arg0, %c0_i32, %c0_i32_0 : i32, i32, i32
  }
  func.func @transform_5(%arg0: i32) -> (i32, i32) {
    %c0_i32 = arith.constant 0 : i32
    %c0_i32_0 = arith.constant 0 : i32
    %c0_i32_1 = arith.constant 0 : i32
    return %c0_i32, %c0_i32_0 : i32, i32
  }
  func.func @transform_6(%arg0: i32) -> (i32, i32) {
    %c0_i32 = arith.constant 0 : i32
    %c0_i32_0 = arith.constant 0 : i32
    %c0_i32_1 = arith.constant 0 : i32
    return %c0_i32, %c0_i32_0 : i32, i32
  }
  func.func @transform_7(%arg0: i32) -> (i32, i32) {
    %c0_i32 = arith.constant 0 : i32
    %c0_i32_0 = arith.constant 0 : i32
    return %arg0, %c0_i32 : i32, i32
  }
  func.func @transform_8(%arg0: i32) -> (i32, i32, i32) {
    %c0_i32 = arith.constant 0 : i32
    %c0_i32_0 = arith.constant 0 : i32
    %c0_i32_1 = arith.constant 0 : i32
    return %arg0, %c0_i32, %c0_i32_0 : i32, i32, i32
  }
}

</mosaic_0001>

<bundles_post_ra>
// kernel: tpu_custom_call.1
= control target key start
LH: loop header
LB: loop body
LE: loop exit
PB: predicated region body
PF: predicated region fallthrough
CT: control target
= control target key end

     0   :  { %14 = vsyncpa [#allocation3], 0  ;;  %s761_s0 = inlined_call_operand.vmem [shape: f32[2,32], index: 0, kind: input, shape index: {}]   ;;  %s762_s1 = inlined_call_operand.hbm [shape: f32[32,128], index: 1, kind: input, shape index: {}]   ;;  %s763_s2 = inlined_call_operand.vmem [shape: f32[1,128], index: 2, kind: input, shape index: {}]   ;;  %s764_s3 = inlined_call_operand.vmem [shape: bf16[2,8,32], index: 3, kind: input, shape index: {}]   ;;  %s765_s4 = inlined_call_operand.vmem [shape: s32[2,1,8], index: 4, kind: input, shape index: {}]   ;;  %s766_s5 = inlined_call_operand.vmem [shape: bf16[32,2], index: 5, kind: input, shape index: {}]   ;;  %s767_s6 = inlined_call_operand.vmem [shape: f32[1,2], index: 6, kind: input, shape index: {}]   ;;  %s768_s7 = inlined_call_operand.hbm [shape: f32[2,128], index: 7, kind: output, shape index: {0}]   ;;  %s769_s8 = inlined_call_operand.hbm [shape: f32[2,2,8], index: 8, kind: output, shape index: {1}]  }
   0x1   :  { %15 = vsyncpa [#allocation4], 0 }
   0x2   :  { %16 = vsyncpa [#allocation7], 0  ;;  %s583_s27 = smov [#allocation2]   ;;  %s511_s9 = scalar_lea.hbm %s762_s1, 512 }
   0x3   :  { %s24_s28 = sshll.u32 %s583_s27, 4  ;;  %p512_p0 = scmp.ne.s32.totalorder %s762_s1, %s511_s9  ;;  %s25_s28 = int_to_ptr.vmem [resolvable:$true] %s24_s28 }
   0x4   :  { %p515_p1 = scmp.lt.u32.totalorder %s511_s9, %s762_s1 }
   0x6   :  { %p517_p2 = pnand %p515_p1, %p512_p0 }
   0x8   :  { %520 = shalt.err (!%p517_p2)
}
   0x9   :  { %s521_s14 = scalar_lea.vmem %s25_s28, 512  ;;  %p526_p4 = scmp.lt.s32.totalorder %s25_s28, %s25_s28 }
   0xa   :  { %p522_p3 = scmp.ne.s32.totalorder %s25_s28, %s521_s14  ;;  %p527_p5 = scmp.lt.s32.totalorder %s521_s14, %s521_s14 }
   0xc   :  { %p528_p6 = por %p527_p5, %p526_p4 }
   0xe   :  { %p529_p7 = pnand %p528_p6, %p522_p3 }
  0x10   :  { %532 = shalt.err (!%p529_p7)
}
  0x11   :  { %s584_s15 = smov 128   ;;  %s585_s16 = smov 8  }
  0x12   :  { %30 = dma.hbm_to_vmem [thread:$0]  %s762_s1, 512, %s25_s28, [#allocation3], %s584_s15, %s584_s15, %s585_s16  }
  0x13   :  { %577 = dma.done.wait [#allocation3], 512  }
  0x14   :  { %578 = vsyncadd [#allocation3], 4294966784  ;;  %v586_v0 = vmov 0.0|0.0   ;;  %v587_v1 = vmov 0.0   ;;  %vm588_vm0 = vmmov 0   ;;  %v46_v2 = vld [vmem:[#allocation2] sm:$0xff]  ;;  %v131_v12 = vlaneseq }
  0x15   :  { %468 = vmatprep.subr.bf16.mxu0 %v586_v0  ;;  %460 = vmatprep.subr.bf16.mxu1 %v587_v1  ;;  %v47_v3 = vld [vmem:[#allocation2 + $0x8] sm:$0xff]  ;;  %v484_v5 = vld [vmem:[%s766_s5] sm:$0xff]   ;;  %v48_v6 = vld [vmem:[#allocation2 + $0x10] sm:$0xff]  ;;  %vm57_vm1 = vcmask 261120   ;;  %vm150_vm8 = vcmask 1041408   ;;  %vm376_vm12 = vcmask 58368  }
  0x16   :  { %457 = vmatprep.mubr.msk.f32.mxu0 %vm588_vm0, %v587_v1  ;;  %464 = vmatprep.mubr.msk.bf16.mxu1 %vm588_vm0, %v587_v1  ;;  %v469_v4 = vpack.c.bf16 %v47_v3, %v46_v2  ;;  %v49_v7 = vld [vmem:[#allocation2 + $0x18] sm:$0xff]  ;;  %v485_v9 = vld [vmem:[%s766_s5 + $0x8] sm:$0xff]   ;;  %v486_v10 = vld [vmem:[%s764_s3] sm:$0xff]   ;;  %v662_v13 = vand.u32 127, %v131_v12  ;;  %v347_v37 = vshrl.u32 %v131_v12, 7 }
  0x17   :  { %461 = vmatpush3.bf16.msra.mxu1 %v484_v5  ;;  %v472_v8 = vpack.c.bf16 %v49_v7, %v48_v6  ;;  %v45_v11 = vld [vmem:[%s761_s0] sm:$0x3] }
  0x18   :  { %470 = vmatpush3.bf16.msra.mxu0 %v469_v4  ;;  %462 = vmatprep.subr.bf16.mxu1 %v587_v1  ;;  %vm146_vm2 = vcmp.ge.s32.totalorder %v662_v13, 3  ;;  %vm147_vm3 = vcmp.lt.s32.totalorder %v662_v13, 9  ;;  %vm165_vm4 = vcmp.ge.s32.totalorder %v662_v13, 9  ;;  %vm166_vm5 = vcmp.lt.s32.totalorder %v662_v13, 13  ;;  %v434_v14 = vld [vmem:[%s763_s2] ss:$0 sm:$0xff] }
  0x19   :  { %471 = vmatprep.subr.bf16.mxu0 %v586_v0  ;;  %v436_v15 = vld [vmem:[%s767_s6] ss:$0 sm:$0xff]  ;;  %vm674_vm6 = vmand %vm146_vm2, %vm147_vm3  ;;  %vm183_vm9 = vcmp.ge.s32.totalorder %v662_v13, 13  ;;  %vm184_vm10 = vcmp.lt.s32.totalorder %v662_v13, 18  ;;  %v341_v36 = vld [vmem:[%s765_s4 + $0x1] sm:$0x1] }
  0x1a   :  { %vm678_vm7 = vmand %vm165_vm4, %vm166_vm5  ;;  %v340_v34 = vld [vmem:[%s765_s4] sm:$0x1]  ;;  %v343_v39 = vcvt.s32.f32 %v341_v36  ;;  %v348_v40 = vsub.s32 0, %v347_v37  ;;  %vm134_vm13 = vcmp.lt.s32.totalorder %v662_v13, 3  ;;  %s589_s4 = smov [#allocation5]  }
  0x1b   :  { %463 = vmatpush3.bf16.msra.mxu1 %v485_v9  ;;  %vm694_vm11 = vmand %vm183_vm9, %vm184_vm10  ;;  %v342_v35 = vcvt.s32.f32 %v340_v34  ;;  %s409_s29 = sshll.u32 %s589_s4, 4  ;;  %s410_s29 = int_to_ptr.vmem [resolvable:$true] %s409_s29 }
  0x1c   :  { %473 = vmatpush3.bf16.msra.mxu0 %v472_v8  ;;  %v359_v41 = vsub.f32 1.0, %v343_v39  ;;  %v353_v48 = vrot.slane %v343_v39, %v348_v40  ;;  %s533_s30 = scalar_lea.vmem %s410_s29, 32  ;;  %p538_p9 = scmp.lt.s32.totalorder %s410_s29, %s410_s29 }
  0x1d   :  { %v358_v38 = vsub.f32 1.0, %v342_v35  ;;  %v349_v43 = vrot.slane %v342_v35, %v348_v40  ;;  %p534_p8 = scmp.ne.s32.totalorder %s410_s29, %s533_s30  ;;  %p539_p10 = scmp.lt.s32.totalorder %s533_s30, %s533_s30 }
  0x1e   :  { %465 = vmatmul.mubr.msk.bf16.vlgmr.msra.gmra.mrb[0].mxu1 %vm57_vm1, %v486_v10  ;;  %v361_v45 = vmul.f32 1000000.0, %v359_v41 }
  0x1f   :  { %458 = vmatmul.mubr.msk.f32.vlgmr.msra.gmra.mrb[0].mxu0 %vm57_vm1, %v45_v11  ;;  %v360_v42 = vmul.f32 1000000.0, %v358_v38  ;;  %p540_p11 = por %p539_p10, %p538_p9 }
  0x20   :  { %v371_v50 = vrot.slane %v361_v45, %v348_v40 }
  0x21   :  { %v367_v44 = vrot.slane %v360_v42, %v348_v40  ;;  %p541_p12 = pnand %p540_p11, %p534_p8 }
  0xf1   :  { %v269_v18 = vpop.f32.mrb[0].mxu1 }
  0xf2   :  { %v127_v17 = vpop.f32.mrb[0].mxu0  ;;  %v466_v21 = vpop.f32.mrb[1].mxu1  ;;  %v270_v22 = vadd.f32 %v436_v15, %v269_v18 }
  0xf3   :  { %v682_v20 = vadd.f32 %v434_v14, %v127_v17  ;;  %v459_v23 = vpop.f32.mrb[1].mxu0  ;;  %v272_v24 = vpop.f32.mrb[2].mxu1 }
  0xf4   :  { %276 = vxpose.xlu0.b32.start.end [1/1] (short) (narrow) %v270_v22, 8  ;;  %v467_v25 = vpop.f32.mrb[3].mxu1  ;;  %v273_v29 = vadd.f32 %v436_v15, %v272_v24 }
  0xf5   :  { %v149_v26 = vsel %vm674_vm6, %v682_v20, -1e+30  ;;  %v168_v27 = vsel %vm678_vm7, %v682_v20, -1e+30  ;;  %v186_v32 = vsel %vm694_vm11, %v682_v20, -1e+30 }
  0xf6   :  { %v151_v28 = vsel %vm150_vm8, %v149_v26, -inf  ;;  %v169_v30 = vsel %vm150_vm8, %v168_v27, -inf  ;;  %v187_v33 = vsel %vm150_vm8, %v186_v32, -inf  ;;  %v137_v21 = vand.u32 2147483647, %v682_v20 }
  0xf7   :  { %152 = vmax.xlane.f32.xlu1 %v151_v28 }
  0xf8   :  { %308 = vxpose.xlu0.b32.start.end [1/1] (short) (narrow) %v273_v29, 8  ;;  %v138_v22 = vsub.f32 0.0, %v137_v21 }
  0xfa   :  { %v139_v23 = vmul.f32 1.442695, %v138_v22 }
  0xfb   :  { %170 = vmax.xlane.f32.xlu1 %v169_v30 }
 0x125   :  { %188 = vmax.xlane.f32.xlu0 %v187_v33  ;;  %v136_v33 = vmin.f32 %v682_v20, 0.0 }
 0x174   :  { %v292_v46 = vpop.trf.xlu0 }
 0x175   :  { %v356_v47 = vmul.f32 %v349_v43, %v292_v46 }
 0x177   :  { %v374_v49 = vsub.f32 %v356_v47, %v367_v44 }
 0x178   :  { %v324_v51 = vpop.trf.xlu0 }
 0x179   :  { %v357_v52 = vmul.f32 %v353_v48, %v324_v51  ;;  %v377_v53 = vsel %vm376_vm12, %v374_v49, -inf }
 0x17a   :  { %378 = vmax.xlane.f32.xlu1 %v377_v53 }
 0x17b   :  { %v375_v54 = vsub.f32 %v357_v52, %v371_v50 }
 0x17d   :  { %v380_v55 = vsel %vm376_vm12, %v375_v54, -inf }
 0x17e   :  { %381 = vmax.xlane.f32.xlu1 %v380_v55 }
 0x184   :  { %v153_v56 = vpop.xlane.xlu1 %152 }
 0x185   :  { %v154_v57 = vsub.f32 %v149_v26, %v153_v56  ;;  %v160_v37 = vsub.f32 %v682_v20, %v153_v56 }
 0x187   :  { %v155_v58 = vmul.f32 1.442695, %v154_v57 }
 0x188   :  { %v171_v59 = vpop.xlane.xlu1 %170 }
 0x189   :  { %487 = vpow2.f32 %v155_v58  ;;  %v172_v60 = vsub.f32 %v168_v27, %v171_v59  ;;  %v178_v38 = vsub.f32 %v682_v20, %v171_v59 }
 0x18b   :  { %v173_v61 = vmul.f32 1.442695, %v172_v60 }
 0x18d   :  { %489 = vpow2.f32 %v173_v61 }
 0x193   :  { %v488_v62 = vpop.eup %487 }
 0x194   :  { %v157_v63 = vsel %vm150_vm8, %v488_v62, 0.0 }
 0x195   :  { %158 = vadd.xlane.f32.xlu1 %v157_v63 }
 0x197   :  { %v490_v0 = vpop.eup %489 }
 0x198   :  { %v175_v1 = vsel %vm150_vm8, %v490_v0, 0.0 }
 0x199   :  { %176 = vadd.xlane.f32.xlu1 %v175_v1 }
 0x1b2   :  { %v189_v2 = vpop.xlane.xlu0 %188 }
 0x1b3   :  { %v190_v3 = vsub.f32 %v186_v32, %v189_v2  ;;  %v196_v43 = vsub.f32 %v682_v20, %v189_v2 }
 0x1b5   :  { %v191_v4 = vmul.f32 1.442695, %v190_v3 }
 0x1b7   :  { %491 = vpow2.f32 %v191_v4 }
 0x1c1   :  { %v492_v5 = vpop.eup %491 }
 0x1c2   :  { %v193_v6 = vsel %vm150_vm8, %v492_v5, 0.0 }
 0x1c3   :  { %194 = vadd.xlane.f32.xlu1 %v193_v6 }
 0x207   :  { %v379_v7 = vpop.xlane.xlu1 %378 }
 0x208   :  { %v713_v8 = vsub.f32 %v374_v49, %v379_v7 }
 0x20a   :  { %v385_v9 = vmul.f32 1.442695, %v713_v8 }
 0x20b   :  { %v382_v10 = vpop.xlane.xlu1 %381 }
 0x20c   :  { %493 = vpow2.f32 %v385_v9  ;;  %v716_v11 = vsub.f32 %v375_v54, %v382_v10 }
 0x20e   :  { %v387_v12 = vmul.f32 1.442695, %v716_v11 }
 0x210   :  { %495 = vpow2.f32 %v387_v12 }
 0x211   :  { %497 = vpow2.f32 %v139_v23 }
 0x216   :  { %v494_v14 = vpop.eup %493 }
 0x217   :  { %v389_v15 = vsel %vm376_vm12, %v494_v14, 0.0 }
 0x218   :  { %390 = vadd.xlane.f32.xlu1 %v389_v15 }
 0x21a   :  { %v496_v17 = vpop.eup %495 }
 0x21b   :  { %v392_v18 = vsel %vm376_vm12, %v496_v17, 0.0  ;;  %v498_v24 = vpop.eup %497 }
 0x21c   :  { %393 = vadd.xlane.f32.xlu1 %v392_v18  ;;  %v141_v26 = vadd.f32 1.0, %v498_v24 }
 0x21e   :  { %499 = vlog2.f32 %v141_v26 }
 0x222   :  { %v159_v25 = vpop.xlane.xlu1 %158 }
 0x223   :  { %501 = vlog2.f32 %v159_v25 }
 0x226   :  { %v177_v27 = vpop.xlane.xlu1 %176 }
 0x227   :  { %503 = vlog2.f32 %v177_v27 }
 0x228   :  { %v500_v29 = vpop.eup %499 }
 0x229   :  { %v143_v34 = vmul.f32 0.6931472, %v500_v29 }
 0x22b   :  { %v144_v39 = vsub.f32 %v136_v33, %v143_v34 }
 0x22d   :  { %v502_v30 = vpop.eup %501  ;;  %v145_v45 = vsel %vm134_vm13, %v144_v39, 0.0 }
 0x22e   :  { %v162_v35 = vmul.f32 0.6931472, %v502_v30 }
 0x230   :  { %v163_v40 = vsub.f32 %v160_v37, %v162_v35 }
 0x231   :  { %v504_v32 = vpop.eup %503 }
 0x232   :  { %v180_v36 = vmul.f32 0.6931472, %v504_v32  ;;  %v164_v47 = vsel %vm674_vm6, %v163_v40, %v145_v45 }
 0x234   :  { %v181_v42 = vsub.f32 %v178_v38, %v180_v36 }
 0x236   :  { %v182_v48 = vsel %vm678_vm7, %v181_v42, %v164_v47 }
 0x250   :  { %v195_v28 = vpop.xlane.xlu1 %194 }
 0x251   :  { %505 = vlog2.f32 %v195_v28 }
 0x25b   :  { %v506_v41 = vpop.eup %505 }
 0x25c   :  { %v198_v44 = vmul.f32 0.6931472, %v506_v41 }
 0x25e   :  { %v199_v46 = vsub.f32 %v196_v43, %v198_v44 }
 0x260   :  { %v200_v49 = vsel %vm694_vm11, %v199_v46, %v182_v48 }
 0x261   :  { %201 = vst [vmem:[#allocation5] sm:$0x3] %v200_v49 }
 0x262   :  { %544 = shalt.err (!%p541_p12)
}
 0x263   :  { %s545_s11 = scalar_lea.hbm %s768_s7, 32 }
 0x264   :  { %p546_p13 = scmp.ne.s32.totalorder %s768_s7, %s545_s11  ;;  %p549_p0 = scmp.lt.u32.totalorder %s545_s11, %s768_s7 }
 0x266   :  { %p551_p1 = pnand %p549_p0, %p546_p13 }
 0x268   :  { %554 = shalt.err (!%p551_p1)
}
 0x269   :  { %412 = dma.vmem_to_hbm [thread:$0]  %s410_s29, 32, %s768_s7, [#allocation4]  }
 0x26a   :  { %s590_s18 = smov [#allocation6]  }
 0x26b   :  { %s418_s19 = sshll.u32 %s590_s18, 4  ;;  %s419_s19 = int_to_ptr.vmem [resolvable:$true] %s418_s19 }
 0x26c   :  { %s555_s7 = scalar_lea.vmem %s419_s19, 64  ;;  %p560_p3 = scmp.lt.s32.totalorder %s419_s19, %s419_s19 }
 0x26d   :  { %p556_p2 = scmp.ne.s32.totalorder %s419_s19, %s555_s7  ;;  %p561_p4 = scmp.lt.s32.totalorder %s555_s7, %s555_s7 }
 0x26f   :  { %p562_p5 = por %p561_p4, %p560_p3 }
 0x271   :  { %p563_p6 = pnand %p562_p5, %p556_p2 }
 0x2a5   :  { %v391_v13 = vpop.xlane.xlu1 %390 }
 0x2a6   :  { %507 = vlog2.f32 %v391_v13 }
 0x2a9   :  { %v394_v16 = vpop.xlane.xlu1 %393 }
 0x2aa   :  { %509 = vlog2.f32 %v394_v16 }
 0x2b0   :  { %v508_v19 = vpop.eup %507 }
 0x2b1   :  { %v396_v20 = vmul.f32 0.6931472, %v508_v19 }
 0x2b3   :  { %v399_v31 = vsub.f32 %v713_v8, %v396_v20 }
 0x2b4   :  { %v510_v50 = vpop.eup %509 }
 0x2b5   :  { %401 = vst.msk [vmem:[#allocation6] sm:$0x3] %vm376_vm12, %v399_v31  ;;  %v398_v51 = vmul.f32 0.6931472, %v510_v50 }
 0x2b7   :  { %v400_v52 = vsub.f32 %v716_v11, %v398_v51 }
 0x2b9   :  { %402 = vst.msk [vmem:[#allocation6 + $0x2] sm:$0x3] %vm376_vm12, %v400_v52 }
 0x2ba   :  { %566 = shalt.err (!%p563_p6)
}
 0x2bb   :  { %s567_s21 = scalar_lea.hbm %s769_s8, 64 }
 0x2bc   :  { %p568_p7 = scmp.ne.s32.totalorder %s769_s8, %s567_s21  ;;  %p571_p8 = scmp.lt.u32.totalorder %s567_s21, %s769_s8 }
 0x2be   :  { %p573_p9 = pnand %p571_p8, %p568_p7 }
 0x2c0   :  { %576 = shalt.err (!%p573_p9)
}
 0x2c1   :  { %s591_s3 = smov 32   ;;  %s592_s5 = smov 2  }
 0x2c2   :  { %424 = dma.vmem_to_hbm [thread:$0]  %s419_s19, 64, %s769_s8, [#allocation7], %s591_s3, %s591_s3, %s592_s5  }
 0x2c3   :  { %579 = dma.done.wait [#allocation4], 32  }
 0x2c4   :  { %580 = vsyncadd [#allocation4], 4294967264 }
 0x2c5   :  { %581 = dma.done.wait [#allocation7], 64  }
 0x2c6   :  { %582 = vsyncadd [#allocation7], 4294967232 }
 0x2c7   :  { %431 = vsyncpa [#allocation3], 1 }
 0x2c8   :  { %432 = vsyncpa [#allocation4], 1 }
 0x2c9   :  { %433 = vsyncpa [#allocation7], 1 }

</bundles_post_ra>
